<compile_context>
chip_gen: v7x
topology: tpu7x:2x2x1
jax: 0.10.0
libtpu: 0.0.40
codegen_flags: <defaults>
</compile_context>

<pallas_src>
import functools

import jax
import jax.numpy as jnp
from jax.experimental import pallas as pl
from jax.experimental.pallas import tpu as pltpu

Temporal_layer = 4
EPS = 1e-10
NEG_SLOPE = 0.2  # LeakyReLU slope used by _MultiLayerPercep

# MXU operand dtype (accumulation stays f32).  Set to jnp.float32 for exact f32 math.
MATMUL_DTYPE = jnp.bfloat16


def _bf(x):
    return x.astype(MATMUL_DTYPE)


def _mm(a, b):
    return jnp.dot(_bf(a), _bf(b), preferred_element_type=jnp.float32)


def _round_up(n, m):
    return ((n + m - 1) // m) * m


def _full_spec(shape):
    n = len(shape)
    return pl.BlockSpec(shape, lambda i, _n=n: (0,) * _n)


_ARB = pltpu.CompilerParams(dimension_semantics=("arbitrary",))
_PAR = pltpu.CompilerParams(dimension_semantics=("parallel",))


# --------------------------------------------------------------------- two-input MLP
# y = lin2(leaky_relu(a @ W1a + b @ W1b + b1)) : implements MLP(cat([a, b], -1))
# without materializing the concat.  Row-blocked grid ("parallel") -> 2 TCs on v7x.
def _mlp2_kernel(a_ref, b_ref, w1a_ref, w1b_ref, b1_ref, w2_ref, b2_ref, o_ref):
    h = _mm(a_ref[...], w1a_ref[...]) + _mm(b_ref[...], w1b_ref[...]) + b1_ref[...]
    h = jnp.where(h > 0, h, NEG_SLOPE * h)
    o_ref[...] = _mm(h, w2_ref[...]) + b2_ref[...]


def mlp_two_input(a, b, p):
    R, Da = a.shape
    Db = b.shape[1]
    w1 = p["lin1"]["w"]            # (Da+Db, Dh)
    Dh = w1.shape[1]
    w2 = p["lin2"]["w"]            # (Dh, Do)
    Do = w2.shape[1]

    nblk = 2 if R >= 16 else 1
    RB = _round_up(pl.cdiv(R, nblk), 8)
    Rp = RB * nblk
    if Rp != R:
        pad = Rp - R
        a = jnp.pad(a, ((0, pad), (0, 0)))
        b = jnp.pad(b, ((0, pad), (0, 0)))

    out = pl.pallas_call(
        _mlp2_kernel,
        grid=(nblk,),
        in_specs=[
            pl.BlockSpec((RB, Da), lambda i: (i, 0)),
            pl.BlockSpec((RB, Db), lambda i: (i, 0)),
            pl.BlockSpec((Da, Dh), lambda i: (0, 0)),
            pl.BlockSpec((Db, Dh), lambda i: (0, 0)),
            pl.BlockSpec((1, Dh), lambda i: (0, 0)),
            pl.BlockSpec((Dh, Do), lambda i: (0, 0)),
            pl.BlockSpec((1, Do), lambda i: (0, 0)),
        ],
        out_specs=pl.BlockSpec((RB, Do), lambda i: (i, 0)),
        out_shape=jax.ShapeDtypeStruct((Rp, Do), jnp.float32),
        compiler_params=_PAR,
    )(a, b, w1[:Da], w1[Da:], p["lin1"]["b"].reshape(1, Dh),
      w2, p["lin2"]["b"].reshape(1, Do))
    return out[:R]


# ----------------------------------------------------------- fused attention aggregate
# For each row r (of R rows) with N candidates of width D:
#   y1 = y_r @ Wlin + blin ; q1 = q_r @ Wlin + blin
#   h  = leaky_relu(y1 @ Wa_y + q1 @ Wa_q + ba)         (att MLP layer 1, split weight)
#   logit = sum(h * wa2, -1) + ba2                       (att MLP layer 2, out dim 1)
#   miu = exp(logit) * mask ; miu /= (sum_n miu + eps)   (matches the PyTorch reference:
#                                                         no max-subtraction)
#   vals = y1 if use_proj_vals else y_r
#   out_r = relu((sum_n miu * vals) @ Wagg + bagg)
def _att_site_kernel(y_ref, q_ref, mask_ref, lw_ref, lb_ref,
                     awy_ref, awq_ref, ab1_ref, aw2_ref, ab2_ref,
                     gw_ref, gb_ref, o_ref, *, use_proj_vals):
    R = y_ref.shape[0]
    lw = _bf(lw_ref[...]); lb = lb_ref[...]
    awy = _bf(awy_ref[...]); awq = _bf(awq_ref[...]); ab1 = ab1_ref[...]
    aw2 = aw2_ref[...]; ab2 = ab2_ref[...]
    gw = _bf(gw_ref[...]); gb = gb_ref[...]
    for r in range(R):                                    # R is tiny & static (<= 8)
        y_r = y_ref[r]                                    # (N, D)
        q_r = q_ref[r]                                    # (N, D)
        m_r = mask_ref[r]                                 # (N, 1)
        y1 = jnp.dot(_bf(y_r), lw, preferred_element_type=jnp.float32) + lb
        q1 = jnp.dot(_bf(q_r), lw, preferred_element_type=jnp.float32) + lb
        h = (jnp.dot(_bf(y1), awy, preferred_element_type=jnp.float32)
             + jnp.dot(_bf(q1), awq, preferred_element_type=jnp.float32) + ab1)
        h = jnp.where(h > 0, h, NEG_SLOPE * h)
        logit = jnp.sum(h * aw2, axis=1, keepdims=True) + ab2       # (N, 1)
        miu = jnp.exp(logit) * m_r
        wgt = miu / (jnp.sum(miu, axis=0, keepdims=True) + EPS)     # (N, 1)
        vals = y1 if use_proj_vals else y_r
        agg = jnp.sum(wgt * vals, axis=0, keepdims=True)            # (1, D)
        z = jnp.dot(_bf(agg), gw, preferred_element_type=jnp.float32) + gb
        o_ref[r] = jnp.maximum(z, 0.0)


def att_site(y3, q3, mask2, lin_p, att_p, agg_p, *, use_proj_vals):
    R, N, D = y3.shape
    Dh = att_p["lin1"]["w"].shape[1]
    kernel = functools.partial(_att_site_kernel, use_proj_vals=use_proj_vals)
    out = pl.pallas_call(
        kernel,
        grid=(1,),
        in_specs=[
            _full_spec((R, N, D)), _full_spec((R, N, D)), _full_spec((R, N, 1)),
            _full_spec((D, D)), _full_spec((1, D)),
            _full_spec((D, Dh)), _full_spec((D, Dh)), _full_spec((1, Dh)),
            _full_spec((1, Dh)), _full_spec((1, 1)),
            _full_spec((D, D)), _full_spec((1, D)),
        ],
        out_specs=_full_spec((R, 1, D)),
        out_shape=jax.ShapeDtypeStruct((R, 1, D), jnp.float32),
        compiler_params=_ARB,
    )(y3, q3, mask2.reshape(R, N, 1),
      lin_p["w"], lin_p["b"].reshape(1, D),
      att_p["lin1"]["w"][:D], att_p["lin1"]["w"][D:], att_p["lin1"]["b"].reshape(1, Dh),
      att_p["lin2"]["w"].reshape(1, Dh), att_p["lin2"]["b"].reshape(1, 1),
      agg_p["w"], agg_p["b"].reshape(1, D))
    return out.reshape(R, D)


# --------------------------------------------------------------- fused multi-layer LSTM
# One kernel per sweep.  x is passed time-major and flattened to (T*Bp, D) with the
# batch padded to a multiple of 8 so all per-step slices / scratch stores are aligned.
# Per layer: one hoisted (T*Bp, D)x(D, 4H) input-projection matmul, then T recurrent
# (Bp, H)x(H, 4H) matmuls.  Only the final hidden state of the last layer is returned
# (that is all the model uses: output[:, -1, :]).
def _lstm_kernel(x_ref, h0_ref, c0_ref, wih_ref, whh_ref, b_ref, o_ref, seq_ref):
    L, Bp, H = h0_ref.shape
    T = x_ref.shape[0] // Bp
    layer_in = x_ref[...]                                 # (T*Bp, D), time-major
    h = h0_ref[0]
    for l in range(L):
        wih = _bf(wih_ref[l])                             # (D, 4H)  (D == H here)
        whh = _bf(whh_ref[l])                             # (H, 4H)
        bias = b_ref[l]                                   # (1, 4H)
        # hoisted input projection for every timestep of this layer
        xproj = jnp.dot(_bf(layer_in), wih, preferred_element_type=jnp.float32) + bias
        h = h0_ref[l]
        c = c0_ref[l]
        for t in range(T):
            gates = xproj[t * Bp:(t + 1) * Bp, :] + jnp.dot(
                _bf(h), whh, preferred_element_type=jnp.float32)    # (Bp, 4H)
            i_g = jax.nn.sigmoid(gates[:, 0:H])
            f_g = jax.nn.sigmoid(gates[:, H:2 * H])
            g_g = jnp.tanh(gates[:, 2 * H:3 * H])
            o_g = jax.nn.sigmoid(gates[:, 3 * H:4 * H])
            c = f_g * c + i_g * g_g
            h = o_g * jnp.tanh(c)
            if l < L - 1:
                seq_ref[t * Bp:(t + 1) * Bp, :] = h       # aligned (Bp % 8 == 0)
        if l < L - 1:
            layer_in = seq_ref[...]
    o_ref[...] = h


def temporal_lstm_last(x_btd, h0, c0, wih, whh, b):
    """x_btd: (Bc, T, D); h0/c0: (L, Bc, H) -> last hidden state of last layer (Bc, H)."""
    Bc, T, Din = x_btd.shape
    L, _, H = h0.shape
    Bp = _round_up(Bc, 8)
    if Bp != Bc:
        pad = Bp - Bc
        x_btd = jnp.pad(x_btd, ((0, pad), (0, 0), (0, 0)))
        h0 = jnp.pad(h0, ((0, 0), (0, pad), (0, 0)))
        c0 = jnp.pad(c0, ((0, 0), (0, pad), (0, 0)))
    x_tm = jnp.transpose(x_btd, (1, 0, 2)).reshape(T * Bp, Din)     # time-major rows

    out = pl.pallas_call(
        _lstm_kernel,
        grid=(1,),
        in_specs=[
            _full_spec((T * Bp, Din)),
            _full_spec((L, Bp, H)), _full_spec((L, Bp, H)),
            _full_spec((L, Din, 4 * H)), _full_spec((L, H, 4 * H)),
            _full_spec((L, 1, 4 * H)),
        ],
        out_specs=_full_spec((Bp, H)),
        out_shape=jax.ShapeDtypeStruct((Bp, H), jnp.float32),
        scratch_shapes=[pltpu.VMEM((T * Bp, H), jnp.float32)],
        compiler_params=_ARB,
    )(x_tm, h0, c0, wih, whh, b)
    return out[:Bc]


# -------------------------------------------------------------------- fused combine MLP
def _combine_kernel(a_ref, b_ref, c_ref, w1a_ref, w1b_ref, w1c_ref, b1_ref,
                    w2_ref, b2_ref, o_ref):
    h = (_mm(a_ref[...], w1a_ref[...]) + _mm(b_ref[...], w1b_ref[...])
         + _mm(c_ref[...], w1c_ref[...]) + b1_ref[...])
    h = jnp.maximum(h, 0.0)
    z = _mm(h, w2_ref[...]) + b2_ref[...]
    o_ref[...] = jnp.maximum(z, 0.0)


def combine_mlp(a, b, c, p1, p2):
    Bm, D = a.shape
    w1 = p1["w"]               # (3D, 2D)
    Dh = w1.shape[1]
    w2 = p2["w"]               # (2D, D)
    Do = w2.shape[1]
    return pl.pallas_call(
        _combine_kernel,
        grid=(1,),
        in_specs=[_full_spec((Bm, D)), _full_spec((Bm, D)), _full_spec((Bm, D)),
                  _full_spec((D, Dh)), _full_spec((D, Dh)), _full_spec((D, Dh)),
                  _full_spec((1, Dh)), _full_spec((Dh, Do)), _full_spec((1, Do))],
        out_specs=_full_spec((Bm, Do)),
        out_shape=jax.ShapeDtypeStruct((Bm, Do), jnp.float32),
        compiler_params=_ARB,
    )(a, b, c, w1[:D], w1[D:2 * D], w1[2 * D:],
      p1["b"].reshape(1, Dh), w2, p2["b"].reshape(1, Do))


# ----------------------------------------------------------------------------- params
def _init_linear(key, din, dout, scale=0.1):
    kw, kb = jax.random.split(key)
    return {
        "w": scale * jax.random.normal(kw, (din, dout), jnp.float32),
        "b": scale * jax.random.normal(kb, (dout,), jnp.float32),
    }


def init_params(key, emb_dim, num_users, num_items, num_rates, batch_size):
    D = emb_dim
    keys = iter(jax.random.split(key, 64))
    nk = lambda: next(keys)

    def mlp_init(din, dout):
        return {"lin1": _init_linear(nk(), din, din // 2),
                "lin2": _init_linear(nk(), din // 2, dout)}

    params = {
        "user_emb": 0.1 * jax.random.normal(nk(), (num_users, D), jnp.float32),
        "item_emb": 0.1 * jax.random.normal(nk(), (num_items, D), jnp.float32),
        "rate_emb": 0.1 * jax.random.normal(nk(), (num_rates, D), jnp.float32),
        "w1": _init_linear(nk(), D, D),
        "w2": _init_linear(nk(), D, D),
        "w3": _init_linear(nk(), D, D),
        "w4": _init_linear(nk(), D, D),                 # defined but unused in forward
        "g_u": mlp_init(2 * D, D),
        "g_v": mlp_init(2 * D, D),                      # defined but unused in forward
        "item_users_att_i": mlp_init(2 * D, 1),
        "aggre_users_i": _init_linear(nk(), D, D),
        "item_users_att": mlp_init(2 * D, 1),           # unused in forward
        "aggre_users": _init_linear(nk(), D, D),        # unused in forward
        "i_friends_att": mlp_init(2 * D, 1),
        "aggre_i_friends": _init_linear(nk(), D, D),
        "if_friends_att": mlp_init(2 * D, 1),
        "aggre_if_friends": _init_linear(nk(), D, D),
        "combine1": _init_linear(nk(), 3 * D, 2 * D),
        "combine2": _init_linear(nk(), 2 * D, D),
        "h0": jax.random.normal(nk(), (Temporal_layer, batch_size, D), jnp.float32),
        "c0": jax.random.normal(nk(), (Temporal_layer, batch_size, D), jnp.float32),
    }
    # Stacked LSTM weights (input dim == hidden dim == emb_dim for every layer).
    params["temporal"] = (
        0.1 * jax.random.normal(nk(), (Temporal_layer, D, 4 * D), jnp.float32),
        0.1 * jax.random.normal(nk(), (Temporal_layer, D, 4 * D), jnp.float32),
        0.1 * jax.random.normal(nk(), (Temporal_layer, 1, 4 * D), jnp.float32),
    )
    return params


# ----------------------------------------------------------------------------- forward
def item_model_forward(params, iids, i_user_pad, i_item_pad, i_item_user_pad, emb_dim):
    D = emb_dim
    B, Nu, _ = i_user_pad.shape
    Ni = i_item_pad.shape[1]
    Ns = i_item_user_pad.shape[2]

    user_t, item_t, rate_t = params["user_emb"], params["item_emb"], params["rate_emb"]
    emb = lambda tbl, ids: jnp.take(tbl, ids, axis=0)

    # --- embeddings + masks (plain JAX glue) ---
    p_i = emb(user_t, i_user_pad[:, :, 0])                           # (B, Nu, D)
    mask_i = (i_user_pad[:, :, 0] > 0).astype(jnp.float32)           # (B, Nu)
    e_ij = emb(rate_t, i_user_pad[:, :, 1])                          # (B, Nu, D)
    q_item = emb(item_t, iids)                                       # (B, D)
    q_j = mask_i[:, :, None] * q_item[:, None, :]                    # (B, Nu, D)

    p_i_s = emb(user_t, i_item_user_pad[:, :, :, 0])                 # (B, Ni, Ns, D)
    mask_s = (i_item_user_pad[:, :, :, 0] > 0).astype(jnp.float32)   # (B, Ni, Ns)
    er = emb(rate_t, i_item_user_pad[:, :, :, 1])                    # (B, Ni, Ns, D)
    q_items = emb(item_t, i_item_pad)                                # (B, Ni, D)
    q_j_s = mask_s[..., None] * q_items[:, :, None, :]               # (B, Ni, Ns, D)

    # --- g_u MLP applied once to the rows of both call sites (batched M) ---
    R1 = B * Nu
    p_rows = jnp.concatenate([p_i.reshape(R1, D), p_i_s.reshape(-1, D)], axis=0)
    e_rows = jnp.concatenate([e_ij.reshape(R1, D), er.reshape(-1, D)], axis=0)
    y_all = mlp_two_input(p_rows, e_rows, params["g_u"])
    y_ji = y_all[:R1].reshape(B, Nu, D)
    y_ji_s = y_all[R1:].reshape(B, Ni, Ns, D)

    # --- attraction aggregation over interacting users (fused attention chain) ---
    z_jL = att_site(y_ji, q_j, mask_i,
                    params["w1"], params["item_users_att_i"], params["aggre_users_i"],
                    use_proj_vals=True)                              # (B, D)

    # --- temporal path: one fused LSTM sweep per site, Ni folded into the batch ---
    wih, whh, bl = params["temporal"]
    z_jS = temporal_lstm_last(y_ji, params["h0"], params["c0"], wih, whh, bl)   # (B, D)
    z_jA = z_jL * z_jS                                               # dropout = identity

    h0s = jnp.repeat(params["h0"], Ni, axis=1)                       # (L, B*Ni, D)
    c0s = jnp.repeat(params["c0"], Ni, axis=1)
    z_kS = temporal_lstm_last(y_ji_s.reshape(B * Ni, Ns, D), h0s, c0s, wih, whh, bl)
    z_kS = z_kS.reshape(B, Ni, D)

    # --- correlative aggregation over each correlated item's users (fused) ---
    z_kL = att_site(y_ji_s.reshape(B * Ni, Ns, D), q_j_s.reshape(B * Ni, Ns, D),
                    mask_s.reshape(B * Ni, Ns),
                    params["w2"], params["i_friends_att"], params["aggre_i_friends"],
                    use_proj_vals=False).reshape(B, Ni, D)
    z_kA = z_kL * z_kS                                               # dropout = identity

    # --- aggregation over correlated items (fused) ---
    mask_si = (i_item_pad > 0).astype(jnp.float32)                   # (B, Ni)
    z_jN = att_site(z_kA, q_items, mask_si,
                    params["w3"], params["if_friends_att"], params["aggre_if_friends"],
                    use_proj_vals=False)                             # (B, D)

    # --- item-friends aggregation (fused) ---
    p_i2 = mask_si[..., None] * q_item[:, None, :]                   # (B, Ni, D)
    z_if = att_site(q_items, p_i2, mask_si,
                    params["w2"], params["i_friends_att"], params["aggre_i_friends"],
                    use_proj_vals=True)                              # (B, D)

    # --- combine MLP (dropouts identity in eval mode) ---
    z = combine_mlp(z_jA, z_jN, z_if, params["combine1"], params["combine2"])
    return z                                                         # (B, D)


# ----------------------------------------------------------------------------- main
if __name__ == "__main__":
    emb_dim = 32
    B = 2          # batch_size (must match h0/c0)
    Nu = 8         # padded interacting users per item
    Ni = 4         # padded correlated items per item
    Ns = 8         # padded users per correlated item
    num_users, num_items, num_rates = 20, 20, 6

    key = jax.random.PRNGKey(0)
    kp, k1, k2, k3, k4, k5, k6 = jax.random.split(key, 7)

    params = init_params(kp, emb_dim, num_users, num_items, num_rates, B)

    iids = jax.random.randint(k1, (B,), 0, num_items)
    i_user_ids = jax.random.randint(k2, (B, Nu), 0, num_users)
    i_user_rates = jax.random.randint(k3, (B, Nu), 0, num_rates)
    i_user_pad = jnp.stack([i_user_ids, i_user_rates], axis=2)              # (B, Nu, 2)
    i_item_pad = jax.random.randint(k4, (B, Ni), 0, num_items)              # (B, Ni)
    iiu_ids = jax.random.randint(k5, (B, Ni, Ns), 0, num_users)
    iiu_rates = jax.random.randint(k6, (B, Ni, Ns), 0, num_rates)
    i_item_user_pad = jnp.stack([iiu_ids, iiu_rates], axis=3)               # (B, Ni, Ns, 2)

    z = item_model_forward(params, iids, i_user_pad, i_item_pad, i_item_user_pad, emb_dim)
    z = jax.block_until_ready(z)
    assert z.shape == (B, emb_dim), z.shape
    assert bool(jnp.all(jnp.isfinite(z)))
    print("KERNEL_OK")
</pallas_src>

<mosaic_0001>
module attributes {stable_mosaic.version = 11 : i64} {
  func.func @_mlp2_kernel(%arg0: i32, %arg1: memref<40x32xf32, #tpu.memory_space<vmem>>, %arg2: memref<40x32xf32, #tpu.memory_space<vmem>>, %arg3: memref<32x32xf32, #tpu.memory_space<vmem>>, %arg4: memref<32x32xf32, #tpu.memory_space<vmem>>, %arg5: memref<1x32xf32, #tpu.memory_space<vmem>>, %arg6: memref<32x32xf32, #tpu.memory_space<vmem>>, %arg7: memref<1x32xf32, #tpu.memory_space<vmem>>, %arg8: memref<40x32xf32, #tpu.memory_space<vmem>>) attributes {dimension_semantics = [#tpu.dimension_semantics<parallel>], iteration_bounds = array<i64: 2>, scalar_prefetch = 0 : i64, scratch_operands = 0 : i64, tpu.core_type = #tpu.core_type<tc>, window_params = [{transform_indices = @transform_0, window_bounds = array<i64: 40, 32>}, {transform_indices = @transform_1, window_bounds = array<i64: 40, 32>}, {pipeline_mode = #tpu.pipeline_mode<synchronous>, transform_indices = @transform_2, window_bounds = array<i64: 32, 32>}, {pipeline_mode = #tpu.pipeline_mode<synchronous>, transform_indices = @transform_3, window_bounds = array<i64: 32, 32>}, {pipeline_mode = #tpu.pipeline_mode<synchronous>, transform_indices = @transform_4, window_bounds = array<i64: 1, 32>}, {pipeline_mode = #tpu.pipeline_mode<synchronous>, transform_indices = @transform_5, window_bounds = array<i64: 32, 32>}, {pipeline_mode = #tpu.pipeline_mode<synchronous>, transform_indices = @transform_6, window_bounds = array<i64: 1, 32>}, {transform_indices = @transform_7, window_bounds = array<i64: 40, 32>}]} {
    %c0 = arith.constant 0 : index
    %c0_0 = arith.constant 0 : index
    %0 = vector.load %arg1[%c0, %c0_0] : memref<40x32xf32, #tpu.memory_space<vmem>>, vector<40x32xf32>
    %c0_1 = arith.constant 0 : index
    %c0_2 = arith.constant 0 : index
    %1 = vector.load %arg3[%c0_1, %c0_2] : memref<32x32xf32, #tpu.memory_space<vmem>>, vector<32x32xf32>
    %2 = arith.truncf %0 : vector<40x32xf32> to vector<40x32xbf16>
    %3 = arith.truncf %1 : vector<32x32xf32> to vector<32x32xbf16>
    %cst = arith.constant dense<0.000000e+00> : vector<40x32xf32>
    %4 = tpu.matmul %2, %3, %cst {dimension_numbers = #tpu.dot_dimension_numbers<[1], [0], [0], [1], [0, 0, 1, 1], [], []>} : vector<40x32xbf16>, vector<32x32xbf16>, vector<40x32xf32> -> vector<40x32xf32>
    %c0_3 = arith.constant 0 : index
    %c0_4 = arith.constant 0 : index
    %5 = vector.load %arg2[%c0_3, %c0_4] : memref<40x32xf32, #tpu.memory_space<vmem>>, vector<40x32xf32>
    %c0_5 = arith.constant 0 : index
    %c0_6 = arith.constant 0 : index
    %6 = vector.load %arg4[%c0_5, %c0_6] : memref<32x32xf32, #tpu.memory_space<vmem>>, vector<32x32xf32>
    %7 = arith.truncf %5 : vector<40x32xf32> to vector<40x32xbf16>
    %8 = arith.truncf %6 : vector<32x32xf32> to vector<32x32xbf16>
    %cst_7 = arith.constant dense<0.000000e+00> : vector<40x32xf32>
    %9 = tpu.matmul %7, %8, %cst_7 {dimension_numbers = #tpu.dot_dimension_numbers<[1], [0], [0], [1], [0, 0, 1, 1], [], []>} : vector<40x32xbf16>, vector<32x32xbf16>, vector<40x32xf32> -> vector<40x32xf32>
    %10 = arith.addf %4, %9 : vector<40x32xf32>
    %c0_8 = arith.constant 0 : index
    %c0_9 = arith.constant 0 : index
    %11 = vector.load %arg5[%c0_8, %c0_9] : memref<1x32xf32, #tpu.memory_space<vmem>>, vector<1x32xf32>
    %12 = vector.broadcast %11 : vector<1x32xf32> to vector<40x32xf32>
    %13 = arith.addf %10, %12 : vector<40x32xf32>
    %cst_10 = arith.constant 0.000000e+00 : f32
    %14 = vector.broadcast %cst_10 : f32 to vector<40x32xf32>
    %15 = arith.cmpf ogt, %13, %14 : vector<40x32xf32>
    %cst_11 = arith.constant 2.000000e-01 : f32
    %16 = vector.broadcast %cst_11 : f32 to vector<40x32xf32>
    %17 = arith.mulf %16, %13 : vector<40x32xf32>
    %18 = arith.select %15, %13, %17 : vector<40x32xi1>, vector<40x32xf32>
    %c0_12 = arith.constant 0 : index
    %c0_13 = arith.constant 0 : index
    %19 = vector.load %arg6[%c0_12, %c0_13] : memref<32x32xf32, #tpu.memory_space<vmem>>, vector<32x32xf32>
    %20 = arith.truncf %18 : vector<40x32xf32> to vector<40x32xbf16>
    %21 = arith.truncf %19 : vector<32x32xf32> to vector<32x32xbf16>
    %cst_14 = arith.constant dense<0.000000e+00> : vector<40x32xf32>
    %22 = tpu.matmul %20, %21, %cst_14 {dimension_numbers = #tpu.dot_dimension_numbers<[1], [0], [0], [1], [0, 0, 1, 1], [], []>} : vector<40x32xbf16>, vector<32x32xbf16>, vector<40x32xf32> -> vector<40x32xf32>
    %c0_15 = arith.constant 0 : index
    %c0_16 = arith.constant 0 : index
    %23 = vector.load %arg7[%c0_15, %c0_16] : memref<1x32xf32, #tpu.memory_space<vmem>>, vector<1x32xf32>
    %24 = vector.broadcast %23 : vector<1x32xf32> to vector<40x32xf32>
    %25 = arith.addf %22, %24 : vector<40x32xf32>
    %c0_17 = arith.constant 0 : index
    %c0_18 = arith.constant 0 : index
    %26 = vector.load %arg8[%c0_17, %c0_18] : memref<40x32xf32, #tpu.memory_space<vmem>>, vector<40x32xf32>
    tpu.vector_store %arg8[%c0_17, %c0_18], %25 {strides = array<i32>} : memref<40x32xf32, #tpu.memory_space<vmem>>, vector<40x32xf32>,
    return
  }
  func.func @transform_0(%arg0: i32) -> (i32, i32) {
    %c0_i32 = arith.constant 0 : i32
    %c0_i32_0 = arith.constant 0 : i32
    return %arg0, %c0_i32 : i32, i32
  }
  func.func @transform_1(%arg0: i32) -> (i32, i32) {
    %c0_i32 = arith.constant 0 : i32
    %c0_i32_0 = arith.constant 0 : i32
    return %arg0, %c0_i32 : i32, i32
  }
  func.func @transform_2(%arg0: i32) -> (i32, i32) {
    %c0_i32 = arith.constant 0 : i32
    %c0_i32_0 = arith.constant 0 : i32
    %c0_i32_1 = arith.constant 0 : i32
    return %c0_i32, %c0_i32_0 : i32, i32
  }
  func.func @transform_3(%arg0: i32) -> (i32, i32) {
    %c0_i32 = arith.constant 0 : i32
    %c0_i32_0 = arith.constant 0 : i32
    %c0_i32_1 = arith.constant 0 : i32
    return %c0_i32, %c0_i32_0 : i32, i32
  }
  func.func @transform_4(%arg0: i32) -> (i32, i32) {
    %c0_i32 = arith.constant 0 : i32
    %c0_i32_0 = arith.constant 0 : i32
    %c0_i32_1 = arith.constant 0 : i32
    return %c0_i32, %c0_i32_0 : i32, i32
  }
  func.func @transform_5(%arg0: i32) -> (i32, i32) {
    %c0_i32 = arith.constant 0 : i32
    %c0_i32_0 = arith.constant 0 : i32
    %c0_i32_1 = arith.constant 0 : i32
    return %c0_i32, %c0_i32_0 : i32, i32
  }
  func.func @transform_6(%arg0: i32) -> (i32, i32) {
    %c0_i32 = arith.constant 0 : i32
    %c0_i32_0 = arith.constant 0 : i32
    %c0_i32_1 = arith.constant 0 : i32
    return %c0_i32, %c0_i32_0 : i32, i32
  }
  func.func @transform_7(%arg0: i32) -> (i32, i32) {
    %c0_i32 = arith.constant 0 : i32
    %c0_i32_0 = arith.constant 0 : i32
    return %arg0, %c0_i32 : i32, i32
  }
}

</mosaic_0001>

<bundles_post_ra>
// kernel: tpu_custom_call.1
= control target key start
LH: loop header
LB: loop body
LE: loop exit
PB: predicated region body
PF: predicated region fallthrough
CT: control target
= control target key end

     0   :  { %s793_s24 = smov 0   ;;  %s900_s0 = inlined_call_operand.vmem [shape: f32[80,32], index: 0, kind: input, shape index: {}]   ;;  %s901_s1 = inlined_call_operand.vmem [shape: f32[80,32], index: 1, kind: input, shape index: {}]   ;;  %s902_s2 = inlined_call_operand.vmem [shape: f32[32,32], index: 2, kind: input, shape index: {}]   ;;  %s903_s3 = inlined_call_operand.vmem [shape: f32[32,32], index: 3, kind: input, shape index: {}]   ;;  %s904_s4 = inlined_call_operand.vmem [shape: f32[1,32], index: 4, kind: input, shape index: {}]   ;;  %s905_s5 = inlined_call_operand.vmem [shape: f32[32,32], index: 5, kind: input, shape index: {}]   ;;  %s906_s6 = inlined_call_operand.vmem [shape: f32[1,32], index: 6, kind: input, shape index: {}]   ;;  %s907_s7 = inlined_call_operand.vmem [shape: f32[80,32], index: 7, kind: output, shape index: {}]  }
   0x1 LB: > { %s645_s25 = sadd.s32 4294967295, %s749_s24   ;;  %p649_p0 = scmp.ge.s32.totalorder %s749_s24, 1  ;;  %s749_s24 = sphi %s793_s24, %s17_s24  }
   0x2   : > { %p249_p1 = scmp.lt.s32.totalorder %s749_s24, 3 }
   0x4   : > { %p250_p2 = pnand %p649_p0, %p249_p1 }
   0x5   : > { %v324_v0 = vld [vmem:[%s903_s3] sm:$0xff] (!%p250_p2)  ;;  %v325_v1 = vld [vmem:[%s903_s3 + $0x8] sm:$0xff] (!%p250_p2)  ;;  %v326_v2 = vld [vmem:[%s903_s3 + $0x10] sm:$0xff] (!%p250_p2)  ;;  %s286_s9 = smul.u32 (!%p250_p2), 5, %s645_s25  ;;  %v751_v3 = vmov (!%p250_p2), 0.0   ;;  %vm752_vm0 = vmmov (!%p250_p2), 0  }
   0x6   : > { %253 = sbr.rel (%p250_p2) target bundleno = 489 (0x1e9), region = 48  ;;  %729 = vmatprep.subr.bf16.mxu1 (!%p250_p2), %v751_v3  ;;  %v331_v4 = vpack.c.bf16 (!%p250_p2), %v325_v1, %v324_v0  ;;  %v327_v5 = vld [vmem:[%s903_s3 + $0x18] sm:$0xff] (!%p250_p2)  ;;  %689 = vmatprep.mubr.msk.bf16.mxu1 (!%p250_p2), %vm752_vm0, %v751_v3  ;;  %v310_v7 = vld [vmem:[%s902_s2] sm:$0xff] (!%p250_p2)  ;;  %v311_v8 = vld [vmem:[%s902_s2 + $0x8] sm:$0xff] (!%p250_p2)  ;;  %vm333_vm1 = vcmask (!%p250_p2), 261120  }
   0x7   : > { %p287_p3 = scmp.lt.s32.totalorder (!%p250_p2), %s286_s9, 9  ;;  %681 = vmatprep.subr.bf16.mxu0 (!%p250_p2), %v751_v3  ;;  %685 = vmatprep.mubr.msk.bf16.mxu0 (!%p250_p2), %vm752_vm0, %v751_v3  ;;  %v332_v6 = vpack.c.bf16 (!%p250_p2), %v327_v5, %v326_v2  ;;  %v317_v11 = vpack.c.bf16 (!%p250_p2), %v311_v8, %v310_v7  ;;  %v312_v12 = vld [vmem:[%s902_s2 + $0x10] sm:$0xff] (!%p250_p2)  ;;  %v313_v14 = vld [vmem:[%s902_s2 + $0x18] sm:$0xff] (!%p250_p2)  ;;  %v491_v29 = vld [vmem:[%s905_s5] sm:$0xff] (!%p250_p2) }
   0x8   : > { %731 = vmatpush3.bf16.msra.mxu1 (!%p250_p2), %v331_v4  ;;  %682 = vmatpush3.bf16.msra.mxu0 (!%p250_p2), %v331_v4  ;;  %v318_v19 = vpack.c.bf16 (!%p250_p2), %v313_v14, %v312_v12  ;;  %v492_v30 = vld [vmem:[%s905_s5 + $0x8] sm:$0xff] (!%p250_p2)  ;;  %v493_v32 = vld [vmem:[%s905_s5 + $0x10] sm:$0xff] (!%p250_p2)  ;;  %v494_v33 = vld [vmem:[%s905_s5 + $0x18] sm:$0xff] (!%p250_p2) }
   0x9   : > { %730 = vmatprep.subr.bf16.mxu1 (!%p250_p2), %v751_v3  ;;  %683 = vmatprep.subr.bf16.mxu0 (!%p250_p2), %v751_v3  ;;  %v498_v31 = vpack.c.bf16 (!%p250_p2), %v492_v30, %v491_v29  ;;  %v499_v34 = vpack.c.bf16 (!%p250_p2), %v494_v33, %v493_v32  ;;  %v659_v48 = vld [vmem:[%s904_s4] ss:$0 sm:$0xff] (!%p250_p2) }
   0xc   : > { %732 = vmatpush3.bf16.msra.mxu1 (!%p250_p2), %v332_v6  ;;  %684 = vmatpush3.bf16.msra.mxu0 (!%p250_p2), %v332_v6 }
   0xd   : > { %s909_s9 = smov (!%p287_p3, %s286_s9), 9  ;;  %697 = vmatprep.subr.bf16.mxu1 %v751_v3  ;;  %713 = vmatprep.subr.bf16.mxu0 %v751_v3 }
   0xe   : > { %s827_s16 = sshll.u32 %s909_s9, 3 }
   0xf   : > { %s296_s19 = scalar_lea.vmem %s901_s1, %s827_s16  ;;  %s290_s27 = scalar_lea.vmem %s900_s0, %s827_s16 }
  0x10   : > { %v321_v9 = vld [vmem:[%s296_s19 + $0x10] sm:$0xff]  ;;  %v322_v10 = vld [vmem:[%s296_s19 + $0x18] sm:$0xff]  ;;  %v319_v15 = vld [vmem:[%s296_s19] sm:$0xff]  ;;  %s302_s20 = scalar_lea.vmem %s907_s7, %s827_s16 }
  0x11   : > { %v329_v13 = vpack.c.bf16 %v322_v10, %v321_v9  ;;  %v320_v16 = vld [vmem:[%s296_s19 + $0x8] sm:$0xff]  ;;  %v323_v18 = vld [vmem:[%s296_s19 + $0x20] sm:$0xff]  ;;  %v307_v24 = vld [vmem:[%s290_s27 + $0x10] sm:$0xff] }
  0x12   : > { %v328_v17 = vpack.c.bf16 %v320_v16, %v319_v15  ;;  %v330_v20 = vpack.c.bf16 %v323_v18, %v323_v18  ;;  %v305_v21 = vld [vmem:[%s290_s27] sm:$0xff]  ;;  %v306_v22 = vld [vmem:[%s290_s27 + $0x8] sm:$0xff]  ;;  %v308_v25 = vld [vmem:[%s290_s27 + $0x18] sm:$0xff] }
  0x13   : > { %690 = vmatmul.mubr.msk.bf16.vlgmr.msra.gmra.mrb[0].mxu1 %vm333_vm1, %v329_v13  ;;  %v314_v23 = vpack.c.bf16 %v306_v22, %v305_v21  ;;  %v315_v26 = vpack.c.bf16 %v308_v25, %v307_v24  ;;  %v309_v27 = vld [vmem:[%s290_s27 + $0x20] sm:$0xff] }
  0x14   : > { %698 = vmatpush3.bf16.msra.mxu1 %v317_v11  ;;  %693 = vmatprep.mubr.msk.bf16.mxu1 %vm752_vm0, %v751_v3  ;;  %v316_v28 = vpack.c.bf16 %v309_v27, %v309_v27 }
  0x15   : > { %699 = vmatprep.subr.bf16.mxu1 %v751_v3  ;;  %686 = vmatmul.mubr.msk.bf16.vlgmr.msra.gmra.mrb[0].mxu0 %vm333_vm1, %v328_v17 }
  0x16   : > { %717 = vmatprep.mubr.msk.bf16.mxu0 %vm752_vm0, %v751_v3  ;;  %714 = vmatpush3.bf16.msra.mxu0 %v498_v31 }
  0x17   : > { %715 = vmatprep.subr.bf16.mxu0 %v751_v3 }
  0x18   : > { %700 = vmatpush3.bf16.msra.mxu1 %v318_v19 }
  0x1a   : > { %716 = vmatpush3.bf16.msra.mxu0 %v499_v34 }
  0x1b   : > { %694 = vmatmul.mubr.msk.bf16.gmra.mrb[4].mxu1 %vm333_vm1, %v330_v20  ;;  %v660_v20 = vld [vmem:[%s906_s6] ss:$0 sm:$0xff] }
  0x1c   : > { %701 = vmatprep.mubr.msk.bf16.mxu1 %vm752_vm0, %v751_v3 }
  0x23   : > { %702 = vmatmul.mubr.msk.bf16.vlgmr.msra.gmra.mrb[8].mxu1 %vm333_vm1, %v314_v23 }
  0x24   : > { %705 = vmatprep.mubr.msk.bf16.mxu1 %vm752_vm0, %v751_v3 }
  0x2b   : > { %706 = vmatmul.mubr.msk.bf16.gmra.mrb[12].mxu1 %vm333_vm1, %v315_v26 }
  0x2c   : > { %709 = vmatprep.mubr.msk.bf16.mxu1 %vm752_vm0, %v751_v3 }
  0x33   : > { %710 = vmatmul.mubr.msk.bf16.gmra.mrb[16].mxu1 %vm333_vm1, %v316_v28 }
  0xe6   : > { %v385_v35 = vpop.f32.mrb[0].mxu1 }
  0xe7   : > { %v691_v36 = vpop.f32.mrb[1].mxu1 }
  0xe8   : > { %v388_v37 = vpop.f32.mrb[2].mxu1  ;;  %v377_v38 = vpop.f32.mrb[0].mxu0 }
  0xe9   : > { %v692_v39 = vpop.f32.mrb[3].mxu1  ;;  %v687_v40 = vpop.f32.mrb[1].mxu0 }
  0xea   : > { %v380_v41 = vpop.f32.mrb[2].mxu0 }
  0xeb   : > { %v688_v42 = vpop.f32.mrb[3].mxu0 }
  0xee   : > { %v393_v43 = vpop.f32.mrb[4].mxu1 }
  0xef   : > { %v695_v44 = vpop.f32.mrb[5].mxu1 }
  0xf0   : > { %v396_v45 = vpop.f32.mrb[6].mxu1 }
  0xf1   : > { %v696_v46 = vpop.f32.mrb[7].mxu1 }
  0xf6   : > { %v442_v47 = vpop.f32.mrb[8].mxu1 }
  0xf7   : > { %v443_v49 = vadd.f32 %v442_v47, %v377_v38  ;;  %v703_v50 = vpop.f32.mrb[9].mxu1 }
  0xf8   : > { %v445_v51 = vpop.f32.mrb[10].mxu1 }
  0xf9   : > { %v471_v52 = vadd.f32 %v659_v48, %v443_v49  ;;  %v446_v53 = vadd.f32 %v445_v51, %v380_v41  ;;  %v704_v54 = vpop.f32.mrb[11].mxu1 }
  0xfb   : > { %v481_v55 = vmul.f32 0.2, %v471_v52  ;;  %v472_v56 = vadd.f32 %v659_v48, %v446_v53  ;;  %vm476_vm2 = vcmp.gt.f32.partialorder %v471_v52, 0.0 }
  0xfd   : > { %vm477_vm3 = vcmp.gt.f32.partialorder %v472_v56, 0.0  ;;  %v482_v57 = vmul.f32 0.2, %v472_v56  ;;  %v486_v59 = vsel %vm476_vm2, %v471_v52, %v481_v55 }
  0xfe   : > { %v450_v58 = vpop.f32.mrb[12].mxu1 }
  0xff   : > { %v487_v60 = vsel %vm477_vm3, %v472_v56, %v482_v57  ;;  %v451_v61 = vadd.f32 %v450_v58, %v385_v35  ;;  %v707_v62 = vpop.f32.mrb[13].mxu1 }
 0x100   : > { %v495_v63 = vpack.c.bf16 %v487_v60, %v486_v59  ;;  %v453_v0 = vpop.f32.mrb[14].mxu1 }
 0x101   : > { %v473_v1 = vadd.f32 %v659_v48, %v451_v61  ;;  %v454_v2 = vadd.f32 %v453_v0, %v388_v37  ;;  %v708_v4 = vpop.f32.mrb[15].mxu1 }
 0x102   : > { %718 = vmatmul.mubr.msk.bf16.vlgmr.msra.gmra.mrb[4].mxu0 %vm333_vm1, %v495_v63 }
 0x103   : > { %v483_v5 = vmul.f32 0.2, %v473_v1  ;;  %v474_v6 = vadd.f32 %v659_v48, %v454_v2  ;;  %721 = vmatprep.mubr.msk.bf16.mxu0 %vm752_vm0, %v751_v3  ;;  %vm478_vm4 = vcmp.gt.f32.partialorder %v473_v1, 0.0 }
 0x105   : > { %vm479_vm5 = vcmp.gt.f32.partialorder %v474_v6, 0.0  ;;  %v484_v7 = vmul.f32 0.2, %v474_v6  ;;  %v488_v9 = vsel %vm478_vm4, %v473_v1, %v483_v5 }
 0x106   : > { %v458_v8 = vpop.f32.mrb[16].mxu1 }
 0x107   : > { %v489_v10 = vsel %vm479_vm5, %v474_v6, %v484_v7  ;;  %v459_v11 = vadd.f32 %v458_v8, %v393_v43  ;;  %v711_v12 = vpop.f32.mrb[17].mxu1 }
 0x108   : > { %v461_v13 = vpop.f32.mrb[18].mxu1  ;;  %v496_v14 = vpack.c.bf16 %v489_v10, %v488_v9 }
 0x109   : > { %v475_v15 = vadd.f32 %v659_v48, %v459_v11  ;;  %v712_v16 = vpop.f32.mrb[19].mxu1 }
 0x10a   : > { %722 = vmatmul.mubr.msk.bf16.gmra.mrb[8].mxu0 %vm333_vm1, %v496_v14 }
 0x10b   : > { %vm480_vm6 = vcmp.gt.f32.partialorder %v475_v15, 0.0  ;;  %v485_v17 = vmul.f32 0.2, %v475_v15  ;;  %725 = vmatprep.mubr.msk.bf16.mxu0 %vm752_vm0, %v751_v3 }
 0x10d   : > { %v490_v18 = vsel %vm480_vm6, %v475_v15, %v485_v17 }
 0x10e   : > { %v497_v19 = vpack.c.bf16 %v490_v18, %v490_v18 }
 0x112   : > { %726 = vmatmul.mubr.msk.bf16.gmra.mrb[12].mxu0 %vm333_vm1, %v497_v19 }
 0x1d5   : > { %v550_v21 = vpop.f32.mrb[4].mxu0 }
 0x1d6   : > { %v551_v22 = vadd.f32 %v660_v20, %v550_v21  ;;  %v719_v23 = vpop.f32.mrb[5].mxu0 }
 0x1d7   : > { %v553_v24 = vpop.f32.mrb[6].mxu0 }
 0x1d8   : > { %572 = vst.msk [vmem:[%s302_s20] sm:$0xff] %vm333_vm1, %v551_v22  ;;  %v554_v25 = vadd.f32 %v660_v20, %v553_v24  ;;  %v720_v3 = vpop.f32.mrb[7].mxu0 }
 0x1da   : > { %573 = vst.msk [vmem:[%s302_s20 + $0x8] sm:$0xff] %vm333_vm1, %v554_v25 }
 0x1dd   : > { %v558_v26 = vpop.f32.mrb[8].mxu0 }
 0x1de   : > { %v559_v27 = vadd.f32 %v660_v20, %v558_v26  ;;  %v723_v28 = vpop.f32.mrb[9].mxu0 }
 0x1df   : > { %v561_v29 = vpop.f32.mrb[10].mxu0 }
 0x1e0   : > { %574 = vst.msk [vmem:[%s302_s20 + $0x10] sm:$0xff] %vm333_vm1, %v559_v27  ;;  %v562_v30 = vadd.f32 %v660_v20, %v561_v29  ;;  %v724_v31 = vpop.f32.mrb[11].mxu0 }
 0x1e2   : > { %575 = vst.msk [vmem:[%s302_s20 + $0x18] sm:$0xff] %vm333_vm1, %v562_v30 }
 0x1e5   : > { %v566_v32 = vpop.f32.mrb[12].mxu0 }
 0x1e6   : > { %v567_v33 = vadd.f32 %v660_v20, %v566_v32  ;;  %v727_v34 = vpop.f32.mrb[13].mxu0 }
 0x1e7   : > { %v569_v35 = vpop.f32.mrb[14].mxu0 }
 0x1e8   : > { %576 = vst.msk [vmem:[%s302_s20 + $0x20] sm:$0xff] %vm333_vm1, %v567_v33  ;;  %v728_v36 = vpop.f32.mrb[15].mxu0 }
 0x1e9 PF: > { %s17_s24 = sadd.s32 1, %s749_s24  }
 0x1ea   : > { %p14_p4 = scmp.ge.s32.totalorder %s17_s24, 4  }
 0x1ec   :  { %16 = sbr.rel (!%p14_p4) target bundleno = 1 (0x1), region = 81 }

</bundles_post_ra>
